<compile_context>
chip_gen: v6e
topology: v6e:2x2x1
jax: 0.10.0
libtpu: 0.0.40
codegen_flags: <defaults>
</compile_context>

<pallas_src>
import functools

import jax
import jax.numpy as jnp
from jax.experimental import pallas as pl
from jax.experimental.pallas import tpu as pltpu

LANES = 128
ROW_TILE = 1024  # rows per grid step; (1024, 128) f32 block = 512 KiB per input


def _wmse_kernel(out_ref, tgt_ref, sum_ref, acc_ref, *,
                 threshold_sq, weight, n_elem, row_tile, steps):
    """Accumulate sum(w * (o - t)^2) per shard; write the shard partial once."""
    c = pl.program_id(0)  # shard axis ("parallel")
    i = pl.program_id(1)  # reduction axis within shard ("arbitrary")

    @pl.when(i == 0)
    def _():
        acc_ref[...] = jnp.zeros_like(acc_ref)

    o = out_ref[...].astype(jnp.float32)
    t = tgt_ref[...].astype(jnp.float32)
    diff = o - t
    sq = diff * diff
    # weights = 1 where |diff| <= threshold, else `weight`  (|d|>T  <=>  d^2>T^2)
    w = jnp.where(sq > threshold_sq, jnp.float32(weight), jnp.float32(1.0))
    contrib = w * sq

    # Mask out lane padding and out-of-bounds rows of the (possibly clamped)
    # last block, using the *logical* block index.  int32 indices: fine for
    # inputs up to ~2^31 elements.
    b = c * steps + i
    row_ids = jax.lax.broadcasted_iota(jnp.int32, (row_tile, LANES), 0)
    lane_ids = jax.lax.broadcasted_iota(jnp.int32, (row_tile, LANES), 1)
    gidx = b * (row_tile * LANES) + row_ids * LANES + lane_ids
    contrib = jnp.where(gidx < n_elem, contrib, jnp.float32(0.0))

    # Pure elementwise (VPU) accumulation — hides under the DMA stream.
    acc_ref[...] += contrib

    @pl.when(i == pl.num_programs(1) - 1)
    def _():
        # Single cross-lane reduce per shard.
        sum_ref[0, 0] = jnp.sum(acc_ref[...])


def weighted_mse_loss(outputs, targets, threshold=0.3, weight=20.0):
    assert outputs.shape == targets.shape
    n_elem = int(outputs.size)

    # Keep native dtype; the kernel casts to f32 internally.
    o = outputs.reshape(-1)
    t = targets.reshape(-1)

    # Only pad (cheaply) to a multiple of 128 lanes when needed so the 2-D view
    # is legal; the padded tail is masked out in the kernel anyway.
    pad = (-n_elem) % LANES
    if pad:
        o = jnp.pad(o, (0, pad))
        t = jnp.pad(t, (0, pad))
    rows = (n_elem + pad) // LANES
    o2 = o.reshape(rows, LANES)
    t2 = t.reshape(rows, LANES)

    # Block rows: big tile for large inputs; full-extent block for small ones
    # (full array dim is always a legal block shape).
    row_tile = ROW_TILE if rows >= ROW_TILE else rows
    num_blocks = -(-rows // row_tile)
    num_shards = 2 if num_blocks >= 2 else 1      # megacore split on v7x
    steps = -(-num_blocks // num_shards)

    def in_map(c, i):
        # Clamp so a fully out-of-range block (odd block counts) re-reads the
        # last valid block; its contribution is masked to zero in the kernel.
        return (jnp.minimum(c * steps + i, num_blocks - 1), 0)

    kernel = functools.partial(
        _wmse_kernel,
        threshold_sq=float(threshold) ** 2,
        weight=float(weight),
        n_elem=n_elem,
        row_tile=int(row_tile),
        steps=int(steps),
    )

    partials = pl.pallas_call(
        kernel,
        out_shape=jax.ShapeDtypeStruct((num_shards, 1), jnp.float32),
        grid_spec=pltpu.PrefetchScalarGridSpec(
            num_scalar_prefetch=0,
            grid=(num_shards, steps),
            in_specs=[
                pl.BlockSpec((row_tile, LANES), in_map),
                pl.BlockSpec((row_tile, LANES), in_map),
            ],
            out_specs=pl.BlockSpec(
                (1, 1), lambda c, i: (c, 0), memory_space=pltpu.SMEM
            ),
            scratch_shapes=[pltpu.VMEM((row_tile, LANES), jnp.float32)],
        ),
        compiler_params=pltpu.CompilerParams(
            dimension_semantics=("parallel", "arbitrary"),
        ),
    )(o2, t2)

    return jnp.sum(partials) / jnp.float32(n_elem)


if __name__ == "__main__":
    key = jax.random.PRNGKey(0)
    k1, k2 = jax.random.split(key)
    # Small NCHW-like shapes consistent with a ConvBiLSTM regression output.
    shape = (2, 4, 16, 16)
    outputs = jax.random.normal(k1, shape, dtype=jnp.float32)
    targets = jax.random.normal(k2, shape, dtype=jnp.float32)

    loss = weighted_mse_loss(outputs, targets, threshold=0.3, weight=20.0)
    loss = jax.block_until_ready(loss)

    # Pure-JAX reference check (matches the PyTorch semantics).
    diff = outputs - targets
    w = jnp.where(jnp.abs(diff) > 0.3, 20.0, 1.0)
    ref = jnp.mean(w * diff * diff)
    assert jnp.allclose(loss, ref, rtol=1e-5, atol=1e-6), (loss, ref)

    print("KERNEL_OK")
</pallas_src>

<mosaic_0001>
module attributes {stable_mosaic.version = 11 : i64} {
  func.func @_wmse_kernel(%arg0: i32, %arg1: i32, %arg2: memref<16x128xf32, #tpu.memory_space<vmem>>, %arg3: memref<16x128xf32, #tpu.memory_space<vmem>>, %arg4: memref<1x1xf32, #tpu.memory_space<smem>>, %arg5: memref<16x128xf32, #tpu.memory_space<vmem>>) attributes {dimension_semantics = [#tpu.dimension_semantics<parallel>, #tpu.dimension_semantics<arbitrary>], iteration_bounds = array<i64: 1, 1>, scalar_prefetch = 0 : i64, scratch_operands = 1 : i64, tpu.core_type = #tpu.core_type<tc>, window_params = [{transform_indices = @transform_0, window_bounds = array<i64: 16, 128>}, {transform_indices = @transform_1, window_bounds = array<i64: 16, 128>}, {transform_indices = @transform_2, window_bounds = array<i64: 1, 1>}]} {
    %c0_i32 = arith.constant 0 : i32
    %0 = arith.cmpi eq, %arg1, %c0_i32 : i32
    %1 = arith.extui %0 : i1 to i32
    %c0_i32_0 = arith.constant 0 : i32
    %2 = arith.cmpi ne, %1, %c0_i32_0 : i32
    scf.if %2 {
      %cst_14 = arith.constant 0.000000e+00 : f32
      %33 = vector.broadcast %cst_14 : f32 to vector<16x128xf32>
      %c0_15 = arith.constant 0 : index
      %c0_16 = arith.constant 0 : index
      %34 = vector.load %arg5[%c0_15, %c0_16] : memref<16x128xf32, #tpu.memory_space<vmem>>, vector<16x128xf32>
      tpu.vector_store %arg5[%c0_15, %c0_16], %33 {strides = array<i32>} : memref<16x128xf32, #tpu.memory_space<vmem>>, vector<16x128xf32>,
    } else {
    }
    %c0 = arith.constant 0 : index
    %c0_1 = arith.constant 0 : index
    %3 = vector.load %arg2[%c0, %c0_1] : memref<16x128xf32, #tpu.memory_space<vmem>>, vector<16x128xf32>
    %c0_2 = arith.constant 0 : index
    %c0_3 = arith.constant 0 : index
    %4 = vector.load %arg3[%c0_2, %c0_3] : memref<16x128xf32, #tpu.memory_space<vmem>>, vector<16x128xf32>
    %5 = arith.subf %3, %4 : vector<16x128xf32>
    %6 = arith.mulf %5, %5 : vector<16x128xf32>
    %cst = arith.constant 9.000000e-02 : f32
    %7 = vector.broadcast %cst : f32 to vector<16x128xf32>
    %8 = arith.cmpf ogt, %6, %7 : vector<16x128xf32>
    %cst_4 = arith.constant 2.000000e+01 : f32
    %cst_5 = arith.constant 1.000000e+00 : f32
    %9 = vector.broadcast %cst_4 : f32 to vector<16x128xf32>
    %10 = vector.broadcast %cst_5 : f32 to vector<16x128xf32>
    %11 = arith.select %8, %9, %10 : vector<16x128xi1>, vector<16x128xf32>
    %12 = arith.mulf %11, %6 : vector<16x128xf32>
    %c1_i32 = arith.constant 1 : i32
    %13 = arith.muli %arg0, %c1_i32 : i32
    %14 = arith.addi %13, %arg1 : i32
    %15 = tpu.iota {dimensions = array<i32: 0>} : vector<16x128xi32>
    %16 = tpu.iota {dimensions = array<i32: 1>} : vector<16x128xi32>
    %c2048_i32 = arith.constant 2048 : i32
    %17 = arith.muli %14, %c2048_i32 : i32
    %c128_i32 = arith.constant 128 : i32
    %18 = vector.broadcast %c128_i32 : i32 to vector<16x128xi32>
    %19 = arith.muli %15, %18 : vector<16x128xi32>
    %20 = vector.broadcast %17 : i32 to vector<16x128xi32>
    %21 = arith.addi %20, %19 : vector<16x128xi32>
    %22 = arith.addi %21, %16 : vector<16x128xi32>
    %c2048_i32_6 = arith.constant 2048 : i32
    %23 = vector.broadcast %c2048_i32_6 : i32 to vector<16x128xi32>
    %24 = arith.cmpi slt, %22, %23 : vector<16x128xi32>
    %cst_7 = arith.constant 0.000000e+00 : f32
    %25 = vector.broadcast %cst_7 : f32 to vector<16x128xf32>
    %26 = arith.select %24, %12, %25 : vector<16x128xi1>, vector<16x128xf32>
    %c0_8 = arith.constant 0 : index
    %c0_9 = arith.constant 0 : index
    %27 = vector.load %arg5[%c0_8, %c0_9] : memref<16x128xf32, #tpu.memory_space<vmem>>, vector<16x128xf32>
    %28 = arith.addf %27, %26 : vector<16x128xf32>
    %c0_10 = arith.constant 0 : index
    %c0_11 = arith.constant 0 : index
    %29 = vector.load %arg5[%c0_10, %c0_11] : memref<16x128xf32, #tpu.memory_space<vmem>>, vector<16x128xf32>
    tpu.vector_store %arg5[%c0_10, %c0_11], %28 {strides = array<i32>} : memref<16x128xf32, #tpu.memory_space<vmem>>, vector<16x128xf32>,
    %c0_i32_12 = arith.constant 0 : i32
    %30 = arith.cmpi eq, %arg1, %c0_i32_12 : i32
    %31 = arith.extui %30 : i1 to i32
    %c0_i32_13 = arith.constant 0 : i32
    %32 = arith.cmpi ne, %31, %c0_i32_13 : i32
    scf.if %32 {
      %c0_14 = arith.constant 0 : index
      %c0_15 = arith.constant 0 : index
      %33 = vector.load %arg5[%c0_14, %c0_15] : memref<16x128xf32, #tpu.memory_space<vmem>>, vector<16x128xf32>
      %34 = vector.shape_cast %33 : vector<16x128xf32> to vector<1x16x128xf32>
      %cst_16 = arith.constant dense<0.000000e+00> : vector<1xf32>
      %35 = vector.multi_reduction <add>, %34, %cst_16 [1, 2] : vector<1x16x128xf32> to vector<1xf32>
      %36 = vector.shape_cast %35 : vector<1xf32> to vector<1x1x1xf32>
      %37 = vector.extract %36[0, 0, 0] : f32 from vector<1x1x1xf32>
      %c0_17 = arith.constant 0 : index
      %c0_18 = arith.constant 0 : index
      %38 = memref.load %arg4[%c0_17, %c0_18] : memref<1x1xf32, #tpu.memory_space<smem>>
      memref.store %37, %arg4[%c0_17, %c0_18] : memref<1x1xf32, #tpu.memory_space<smem>>
    } else {
    }
    return
  }
  func.func @transform_0(%arg0: i32, %arg1: i32) -> (i32, i32) {
    %c1_i32 = arith.constant 1 : i32
    %0 = arith.muli %arg0, %c1_i32 : i32
    %1 = arith.addi %0, %arg1 : i32
    %c0_i32 = arith.constant 0 : i32
    %2 = arith.minsi %1, %c0_i32 : i32
    %c0_i32_0 = arith.constant 0 : i32
    %c0_i32_1 = arith.constant 0 : i32
    return %2, %c0_i32_0 : i32, i32
  }
  func.func @transform_1(%arg0: i32, %arg1: i32) -> (i32, i32) {
    %c1_i32 = arith.constant 1 : i32
    %0 = arith.muli %arg0, %c1_i32 : i32
    %1 = arith.addi %0, %arg1 : i32
    %c0_i32 = arith.constant 0 : i32
    %2 = arith.minsi %1, %c0_i32 : i32
    %c0_i32_0 = arith.constant 0 : i32
    %c0_i32_1 = arith.constant 0 : i32
    return %2, %c0_i32_0 : i32, i32
  }
  func.func @transform_2(%arg0: i32, %arg1: i32) -> (i32, i32) {
    %c0_i32 = arith.constant 0 : i32
    %c0_i32_0 = arith.constant 0 : i32
    return %arg0, %c0_i32 : i32, i32
  }
}

</mosaic_0001>

<bundles_post_ra>
// kernel: tpu_custom_call.1
= control target key start
LH: loop header
LB: loop body
LE: loop exit
PB: predicated region body
PF: predicated region fallthrough
CT: control target
= control target key end

     0   :  { %7 = vsyncpa [#allocation4], 0  ;;  %s232_s0 = inlined_call_operand.hbm [shape: f32[16,128], index: 0, kind: input, shape index: {}]   ;;  %s233_s1 = inlined_call_operand.hbm [shape: f32[16,128], index: 1, kind: input, shape index: {}]   ;;  %s234_s2 = inlined_call_operand.hbm [shape: f32[1,1], index: 2, kind: output, shape index: {}]  }
   0x1   :  { %8 = vsyncpa [#allocation7], 0 }
   0x2   :  { %9 = vsyncpa [#allocation5], 0  ;;  %s202_s9 = smov [#allocation3]  }
   0x3   :  { %s21_s10 = sshll.u32 %s202_s9, 4  ;;  %s22_s10 = int_to_ptr.vmem [resolvable:$true] %s21_s10 }
   0x4   :  { %s156_s11 = scalar_lea.vmem %s22_s10, 256  ;;  %p161_p1 = scmp.lt.s32.totalorder %s22_s10, %s22_s10 }
   0x5   :  { %p157_p0 = scmp.ne.s32.totalorder %s22_s10, %s156_s11  ;;  %p162_p2 = scmp.lt.s32.totalorder %s156_s11, %s156_s11 }
   0x7   :  { %p163_p3 = por %p162_p2, %p161_p1 }
   0x9   :  { %p164_p4 = pnand %p163_p3, %p157_p0 }
   0xb   :  { %167 = shalt.err (!%p164_p4)
}
   0xc   :  { %s203_s12 = smov 128   ;;  %s204_s13 = smov 8  }
   0xd   :  { %27 = dma.hbm_to_vmem [thread:$0]  %s232_s0, 256, %s22_s10, [#allocation4], %s203_s12, %s203_s12, %s204_s13  }
   0xe   :  { %s205_s16 = smov [#allocation6]  }
   0xf   :  { %s39_s17 = sshll.u32 %s205_s16, 4  ;;  %s40_s17 = int_to_ptr.vmem [resolvable:$true] %s39_s17 }
  0x10   :  { %s176_s18 = scalar_lea.vmem %s40_s17, 256  ;;  %p181_p6 = scmp.lt.s32.totalorder %s40_s17, %s40_s17 }
  0x11   :  { %p177_p5 = scmp.ne.s32.totalorder %s40_s17, %s176_s18  ;;  %p182_p7 = scmp.lt.s32.totalorder %s176_s18, %s176_s18 }
  0x13   :  { %p183_p8 = por %p182_p7, %p181_p6 }
  0x15   :  { %p184_p9 = pnand %p183_p8, %p177_p5 }
  0x17   :  { %187 = shalt.err (!%p184_p9)
}
  0x18   :  { %45 = dma.hbm_to_vmem [thread:$0]  %s233_s1, 256, %s40_s17, [#allocation7], %s203_s12, %s203_s12, %s204_s13  }
  0x19   :  { %196 = dma.done.wait [#allocation4], 256  }
  0x1a   :  { %197 = vsyncadd [#allocation4], 4294967040 }
  0x1b   :  { %198 = dma.done.wait [#allocation7], 256  }
  0x1c   :  { %199 = vsyncadd [#allocation7], 4294967040  ;;  %v81_v0 = vlaneseq  ;;  %v66_v6 = vld [vmem:[#allocation3] sm:$0xff]  ;;  %v67_v7 = vld [vmem:[#allocation3 + $0x8] sm:$0xff]  ;;  %v206_v16 = vmov 1.0   ;;  %s207_s1 = smov [#allocation8]  }
  0x1d   :  { %v68_v8 = vld [vmem:[#allocation6] sm:$0xff]  ;;  %v69_v9 = vld [vmem:[#allocation6 + $0x8] sm:$0xff] }
  0x1e   :  { %v82_v1 = vshrl.u32 %v81_v0, 7  ;;  %v85_v3 = vand.u32 127, %v81_v0  ;;  %v70_v10 = vsub.f32 %v66_v6, %v68_v8  ;;  %v71_v11 = vsub.f32 %v67_v7, %v69_v9 }
  0x20   :  { %v83_v2 = vadd.s32 8, %v82_v1  ;;  %v87_v4 = vmul.u32 128, %v82_v1  ;;  %v72_v13 = vmul.f32 %v70_v10, %v70_v10  ;;  %v73_v15 = vmul.f32 %v71_v11, %v71_v11 }
  0x22   :  { %v88_v5 = vmul.u32 128, %v83_v2  ;;  %v92_v12 = vadd.s32 %v87_v4, %v85_v3  ;;  %vm74_vm0 = vcmp.gt.f32.partialorder %v72_v13, 0.09  ;;  %vm75_vm1 = vcmp.gt.f32.partialorder %v73_v15, 0.09 }
  0x23   :  { %v76_v17 = vsel %vm74_vm0, 20.0, %v206_v16  ;;  %v77_v18 = vsel %vm75_vm1, 20.0, %v206_v16 }
  0x24   :  { %v93_v14 = vadd.s32 %v88_v5, %v85_v3  ;;  %vm94_vm2 = vcmp.lt.s32.totalorder %v92_v12, 2048  ;;  %v78_v19 = vmul.f32 %v76_v17, %v72_v13  ;;  %v79_v20 = vmul.f32 %v77_v18, %v73_v15 }
  0x26   :  { %vm95_vm3 = vcmp.lt.s32.totalorder %v93_v14, 2048  ;;  %v96_v21 = vsel %vm94_vm2, %v78_v19, 0.0 }
  0x27   :  { %v97_v22 = vsel %vm95_vm3, %v79_v20, 0.0 }
  0x28   :  { %v109_v23 = vadd.f32 %v97_v22, %v96_v21 }
  0x2a   :  { %110 = vadd.xlane.f32.xlu0 %v109_v23 }
  0xb3   :  { %v111_v24 = vpop.xlane.xlu0 %110 }
  0xb4   :  { %v112_v25 = vrot.slane %v111_v24, 4 }
  0xb6   :  { %v113_v26 = vadd.f32 %v112_v25, %v111_v24 }
  0xb8   :  { %v114_v27 = vrot.slane %v113_v26, 2 }
  0xba   :  { %v115_v28 = vadd.f32 %v114_v27, %v113_v26 }
  0xbc   :  { %v116_v29 = vrot.slane %v115_v28, 1 }
  0xbe   :  { %v117_v30 = vadd.f32 %v116_v29, %v115_v28 }
  0xc0   :  { %140 = vpush %v117_v30 }
  0xf1   :  { %s141_s0 = spop %140 }
  0xf2   :  { %120 = sst [smem:[#allocation8]] %s141_s0 }
  0xf3   :  { %128 = dma.smem_to_hbm %s207_s1, 16, %s234_s2, [#allocation5]  }
  0xf4   :  { %200 = dma.done.wait [#allocation5], 16  }
  0xf5   :  { %201 = vsyncadd [#allocation5], 4294967280 }
  0xf6   :  { %132 = sfence }
  0xf7   :  { %133 = vsyncpa [#allocation4], 1 }
  0xf8   :  { %134 = vsyncpa [#allocation7], 1 }
  0xf9   :  { %135 = vsyncpa [#allocation5], 1 }

</bundles_post_ra>
